<compile_context>
chip_gen: v7x
topology: tpu7x:2x2x1
jax: 0.10.0
libtpu: 0.0.40
codegen_flags: <defaults>
</compile_context>

<pallas_src>
import jax
import jax.numpy as jnp
import numpy as np
from jax import lax
from jax.experimental import pallas as pl
from jax.experimental.pallas import tpu as pltpu


def _round_up(v, m):
    return ((v + m - 1) // m) * m


def _vmem_capacity_bytes():
    try:
        info = pltpu.get_tpu_info()
        return int(getattr(info, "vmem_capacity_bytes", 128 * 2**20))
    except Exception:
        return 128 * 2**20


# ----------------------------- Pallas kernel --------------------------------

def _patch_gemm_bn_relu_kernel(x_ref, w_ref, shift_ref, o_ref):
    # x_ref:     (TM, K_pad)  bf16 im2col-lite patch rows
    # w_ref:     (K_pad, TN)  bf16 conv weights with frozen-BN scale folded in
    # shift_ref: (1, TN)      f32  beta + (conv_bias - running_mean) * scale
    # o_ref:     (TM, TN)     bf16 lane-dense output tile
    acc = jnp.dot(x_ref[...], w_ref[...], preferred_element_type=jnp.float32)
    y = acc + shift_ref[...]
    o_ref[...] = jnp.maximum(y, 0.0).astype(o_ref.dtype)


def fused_patch_gemm_bn_relu(patches, w_fold, shift, *, tm, tn):
    """patches: (M_pad, K_pad) compute-dtype im2col-lite rows
       w_fold:  (K_pad, C_pad) compute-dtype weights (BN scale pre-folded)
       shift:   (1, C_pad)     f32
       returns  (M_pad, C_pad) bf16, lane-dense."""
    m_pad, k_pad = patches.shape
    _, c_pad = w_fold.shape
    assert m_pad % tm == 0 and c_pad % tn == 0

    # C tiles on the OUTER axis: the weight block stays resident while the
    # patch rows stream along the fast-varying M axis.
    grid = (c_pad // tn, m_pad // tm)

    itm = patches.dtype.itemsize
    out_itm = jnp.dtype(jnp.bfloat16).itemsize
    flops = 2 * m_pad * k_pad * c_pad
    bytes_accessed = (patches.size * itm + w_fold.size * itm
                      + shift.size * 4 + m_pad * c_pad * out_itm)

    # VMEM budget: 2x (double-buffered) input blocks + 2x output block.
    x_blk = tm * k_pad * itm
    w_blk = k_pad * tn * itm
    s_blk = tn * 4
    o_blk = tm * tn * out_itm
    need = 2 * (x_blk + w_blk + s_blk) + 2 * o_blk
    cap = min(_vmem_capacity_bytes() // 2, 48 * 2**20)   # ~32 MiB on v7x
    vmem_limit = max(min(max(2 * need, 16 * 2**20), cap), need)

    return pl.pallas_call(
        _patch_gemm_bn_relu_kernel,
        out_shape=jax.ShapeDtypeStruct((m_pad, c_pad), jnp.bfloat16),
        grid_spec=pltpu.PrefetchScalarGridSpec(
            num_scalar_prefetch=0,
            grid=grid,
            in_specs=[
                pl.BlockSpec((tm, k_pad), lambda j, i: (i, 0)),
                pl.BlockSpec((k_pad, tn), lambda j, i: (0, j)),
                pl.BlockSpec((1, tn), lambda j, i: (0, j)),
            ],
            out_specs=pl.BlockSpec((tm, tn), lambda j, i: (i, j)),
        ),
        compiler_params=pltpu.CompilerParams(
            dimension_semantics=("parallel", "parallel"),
            vmem_limit_bytes=int(vmem_limit),
        ),
        cost_estimate=pl.CostEstimate(
            flops=flops, transcendentals=0, bytes_accessed=bytes_accessed),
    )(patches, w_fold, shift)


# ------------------------------- JAX glue ------------------------------------

def freezed_bn_model_forward(x, params, *, compute_dtype=jnp.bfloat16):
    """Frozen-BN forward of the inner conv->BN->ReLU model.  x: NCHW (f32)."""
    N, C_in, H, W = x.shape
    w = params["conv_w"]          # (C_out, C_in, KH, KW)  -- PyTorch layout
    b = params["conv_b"]          # (C_out,)
    gamma, beta = params["bn_w"], params["bn_b"]
    rmean, rvar = params["bn_rm"], params["bn_rv"]
    eps = params["bn_eps"]
    C_out, _, KH, KW = w.shape
    assert KH % 2 == 1 and KW % 2 == 1, "stride-1 'SAME' conv with odd kernel"

    # FreezedBnModel semantics: BN always evaluated with running statistics.
    scale = gamma / jnp.sqrt(rvar + eps)                    # (C_out,)
    shift = beta + (b - rmean) * scale                      # conv bias folded in

    # --- im2col-lite patches in glue (small C_in path) -----------------------
    # patch feature index = (di*KW + dj)*C_in + c, matching the weight reshape.
    x_nhwc = jnp.transpose(x, (0, 2, 3, 1))                 # (N, H, W, C_in)
    x_halo = jnp.pad(x_nhwc, ((0, 0), (KH // 2, KH // 2),
                              (KW // 2, KW // 2), (0, 0)))
    taps = []
    for di in range(KH):
        for dj in range(KW):
            taps.append(x_halo[:, di:di + H, dj:dj + W, :])
    patches = jnp.concatenate(taps, axis=-1).reshape(N * H * W, KH * KW * C_in)

    # Weights -> (K, C_out), fold the frozen-BN scale in f32, cast once later.
    w_mat = jnp.transpose(w, (2, 3, 1, 0)).reshape(KH * KW * C_in, C_out)
    w_fold = w_mat * scale[None, :]

    # --- padding / tiling -----------------------------------------------------
    M = N * H * W
    K = KH * KW * C_in
    k_pad = _round_up(K, 8)
    c_pad = _round_up(C_out, 128)
    tn = 256 if (c_pad >= 256 and c_pad % 256 == 0) else 128

    m8 = _round_up(M, 8)
    tm = min(512, m8)
    if tm >= 256 and (m8 // tm) < 2:          # keep >=2 M tiles for megacore
        tm = _round_up(tm // 2, 8)
    m_pad = _round_up(M, tm)

    patches = jnp.pad(patches, ((0, m_pad - M), (0, k_pad - K)))
    w_fold = jnp.pad(w_fold, ((0, k_pad - K), (0, c_pad - C_out)))
    shift_p = jnp.pad(shift, (0, c_pad - C_out)).reshape(1, c_pad)

    out_flat = fused_patch_gemm_bn_relu(
        patches.astype(compute_dtype),
        w_fold.astype(compute_dtype),
        shift_p.astype(jnp.float32),
        tm=tm, tn=tn)                                       # (M_pad, C_pad) bf16

    out = out_flat[:M, :C_out].reshape(N, H, W, C_out).astype(jnp.float32)
    return jnp.transpose(out, (0, 3, 1, 2))                 # back to NCHW


def reference_forward(x, params):
    """Pure-JAX reference (lax conv + frozen BN + ReLU) for verification."""
    w, b = params["conv_w"], params["conv_b"]
    conv = lax.conv_general_dilated(
        x, w, window_strides=(1, 1), padding="SAME",
        dimension_numbers=("NCHW", "OIHW", "NCHW"))
    conv = conv + b[None, :, None, None]
    scale = params["bn_w"] / jnp.sqrt(params["bn_rv"] + params["bn_eps"])
    y = (conv - params["bn_rm"][None, :, None, None]) * scale[None, :, None, None]
    y = y + params["bn_b"][None, :, None, None]
    return jnp.maximum(y, 0.0)


# --------------------------------- main ---------------------------------------

if __name__ == "__main__":
    key = jax.random.PRNGKey(0)
    k_x, k_w, k_b, k_g, k_be, k_rm, k_rv = jax.random.split(key, 7)

    N, C_in, H, W = 2, 4, 16, 16
    C_out, KH, KW = 8, 3, 3

    x = jax.random.normal(k_x, (N, C_in, H, W), dtype=jnp.float32)

    params = {
        "conv_w": 0.1 * jax.random.normal(k_w, (C_out, C_in, KH, KW), jnp.float32),
        "conv_b": 0.1 * jax.random.normal(k_b, (C_out,), jnp.float32),
        "bn_w":   1.0 + 0.1 * jax.random.normal(k_g, (C_out,), jnp.float32),
        "bn_b":   0.1 * jax.random.normal(k_be, (C_out,), jnp.float32),
        "bn_rm":  0.1 * jax.random.normal(k_rm, (C_out,), jnp.float32),
        "bn_rv":  jnp.abs(jax.random.normal(k_rv, (C_out,), jnp.float32)) + 0.5,
        "bn_eps": 1e-5,
    }

    out = jax.block_until_ready(freezed_bn_model_forward(x, params))
    ref = jax.block_until_ready(reference_forward(x, params))

    # bf16 MXU inputs + bf16 output (f32 accumulate / epilogue) -> loose but
    # bug-catching tolerance against the f32 reference.
    np.testing.assert_allclose(np.asarray(out), np.asarray(ref),
                               rtol=5e-2, atol=5e-2)

    print("KERNEL_OK")
</pallas_src>

<mosaic_0001>
module attributes {stable_mosaic.version = 11 : i64} {
  func.func @_patch_gemm_bn_relu_kernel(%arg0: i32, %arg1: i32, %arg2: memref<256x40xbf16, #tpu.memory_space<vmem>>, %arg3: memref<40x128xbf16, #tpu.memory_space<vmem>>, %arg4: memref<1x128xf32, #tpu.memory_space<vmem>>, %arg5: memref<256x128xbf16, #tpu.memory_space<vmem>>) attributes {dimension_semantics = [#tpu.dimension_semantics<parallel>, #tpu.dimension_semantics<parallel>], iteration_bounds = array<i64: 1, 2>, scalar_prefetch = 0 : i64, scratch_operands = 0 : i64, tpu.core_type = #tpu.core_type<tc>, window_params = [{transform_indices = @transform_0, window_bounds = array<i64: 256, 40>}, {transform_indices = @transform_1, window_bounds = array<i64: 40, 128>}, {transform_indices = @transform_2, window_bounds = array<i64: 1, 128>}, {transform_indices = @transform_3, window_bounds = array<i64: 256, 128>}]} {
    %c0 = arith.constant 0 : index
    %c0_0 = arith.constant 0 : index
    %0 = vector.load %arg2[%c0, %c0_0] : memref<256x40xbf16, #tpu.memory_space<vmem>>, vector<256x40xbf16>
    %c0_1 = arith.constant 0 : index
    %c0_2 = arith.constant 0 : index
    %1 = vector.load %arg3[%c0_1, %c0_2] : memref<40x128xbf16, #tpu.memory_space<vmem>>, vector<40x128xbf16>
    %cst = arith.constant dense<0.000000e+00> : vector<256x128xf32>
    %2 = tpu.matmul %0, %1, %cst {dimension_numbers = #tpu.dot_dimension_numbers<[1], [0], [0], [1], [0, 0, 1, 1], [], []>} : vector<256x40xbf16>, vector<40x128xbf16>, vector<256x128xf32> -> vector<256x128xf32>
    %c0_3 = arith.constant 0 : index
    %c0_4 = arith.constant 0 : index
    %3 = vector.load %arg4[%c0_3, %c0_4] : memref<1x128xf32, #tpu.memory_space<vmem>>, vector<1x128xf32>
    %4 = vector.broadcast %3 : vector<1x128xf32> to vector<256x128xf32>
    %5 = arith.addf %2, %4 : vector<256x128xf32>
    %cst_5 = arith.constant 0.000000e+00 : f32
    %6 = vector.broadcast %cst_5 : f32 to vector<256x128xf32>
    %7 = arith.maximumf %5, %6 : vector<256x128xf32>
    %8 = arith.truncf %7 : vector<256x128xf32> to vector<256x128xbf16>
    %c0_6 = arith.constant 0 : index
    %c0_7 = arith.constant 0 : index
    %9 = vector.load %arg5[%c0_6, %c0_7] : memref<256x128xbf16, #tpu.memory_space<vmem>>, vector<256x128xbf16>
    tpu.vector_store %arg5[%c0_6, %c0_7], %8 {strides = array<i32>} : memref<256x128xbf16, #tpu.memory_space<vmem>>, vector<256x128xbf16>,
    return
  }
  func.func @transform_0(%arg0: i32, %arg1: i32) -> (i32, i32) {
    %c0_i32 = arith.constant 0 : i32
    %c0_i32_0 = arith.constant 0 : i32
    return %arg1, %c0_i32 : i32, i32
  }
  func.func @transform_1(%arg0: i32, %arg1: i32) -> (i32, i32) {
    %c0_i32 = arith.constant 0 : i32
    %c0_i32_0 = arith.constant 0 : i32
    return %c0_i32, %arg0 : i32, i32
  }
  func.func @transform_2(%arg0: i32, %arg1: i32) -> (i32, i32) {
    %c0_i32 = arith.constant 0 : i32
    %c0_i32_0 = arith.constant 0 : i32
    return %c0_i32, %arg0 : i32, i32
  }
  func.func @transform_3(%arg0: i32, %arg1: i32) -> (i32, i32) {
    %c0_i32 = arith.constant 0 : i32
    return %arg1, %arg0 : i32, i32
  }
}

</mosaic_0001>

<bundles_post_ra>
// kernel: tpu_custom_call.1
= control target key start
LH: loop header
LB: loop body
LE: loop exit
PB: predicated region body
PF: predicated region fallthrough
CT: control target
= control target key end

     0   :  { %8 = vsyncpa [#allocation3], 0  ;;  %s1549_s0 = inlined_call_operand.vmem [shape: bf16[512,40], index: 0, kind: input, shape index: {}]   ;;  %s1550_s1 = inlined_call_operand.vmem [shape: bf16[40,128], index: 1, kind: input, shape index: {}]   ;;  %s1551_s2 = inlined_call_operand.vmem [shape: f32[1,128], index: 2, kind: input, shape index: {}]   ;;  %s1552_s3 = inlined_call_operand.hbm [shape: bf16[512,128], index: 3, kind: output, shape index: {}]  }
   0x1   :  { %10 = vsyncpa [#allocation3 + $0x1], 0  ;;  %s1332_s12 = smov 0   ;;  %s1334_s13 = smov 0  }
   0x2   :  { %s1336_s14 = smov 0   ;;  %s1338_s15 = smov 0  }
   0x3   :  { %s1340_s16 = smov 0   ;;  %s1342_s17 = smov 0  }
   0x4 LB: > { %s877_s18 = sadd.s32 4294967295, %s1307_s17   ;;  %s878_s19 = sadd.s32 4294967294, %s1307_s17   ;;  %s1307_s17 = sphi %s1342_s17, %s16_s17   ;;  %s1303_s16 = sphi %s1340_s16, %s1559_s16   ;;  %s1299_s15 = sphi %s1338_s15, %s1558_s15   ;;  %s1295_s14 = sphi %s1336_s14, %s1557_s14   ;;  %s1291_s13 = sphi %s1334_s13, %s1556_s13   ;;  %s1287_s12 = sphi %s1332_s12, %s1555_s12  }
   0x5   : > { %s25_s20 = sadd.s32 1, %s1303_s16  ;;  %s115_s21 = sadd.s32 1, %s1295_s14 }
   0x6   : > { %p26_p0 = scmp.ge.s32.totalorder %s25_s20, 2  ;;  %p125_p1 = scmp.ne.s32.totalorder %s1295_s14, %s1291_s13 }
   0x7   : > { %p126_p2 = scmp.eq.s32.totalorder %s877_s18, 1  ;;  %p131_p3 = scmp.ne.s32.totalorder %s1291_s13, %s1287_s12 }
   0x8   : > { %s1561_s20 = smov (%p26_p0, %s25_s20), 0  ;;  %p132_p5 = scmp.eq.s32.totalorder %s878_s19, 1 }
   0x9   : > { %p1372_p4 = por %p126_p2, %p125_p1  ;;  %s110_s23 = ssub.s32 %s1303_s16, %s1561_s20 }
   0xa   : > { %p883_p6 = scmp.ge.s32.totalorder %s1307_s17, 1  ;;  %p113_p7 = scmp.eq.s32.totalorder %s110_s23, 0 }
   0xb   : > { %p1379_p8 = por %p132_p5, %p131_p3  ;;  %p172_p9 = scmp.lt.s32.totalorder %s1307_s17, 3 }
   0xc   : > { %s1385_s25 = scalar_select %p113_p7, %s1295_s14, %s115_s21  }
   0xd   : > { %p173_p10 = pnand %p883_p6, %p172_p9 }
   0xe   : > { %v1210_v0 = vld [vmem:[%s1550_s1] sm:$0xff] (!%p173_p10)   ;;  %v1211_v1 = vld [vmem:[%s1550_s1 + $0x8] sm:$0xff] (!%p173_p10)   ;;  %s885_s30 = sshll.u32 (!%p173_p10), %s1299_s15, 5  ;;  %v1212_v2 = vld [vmem:[%s1550_s1 + $0x10] ss:$0 sps:$4 sm:$0xff] (!%p173_p10)   ;;  %vm406_vm0 = vcmask (!%p173_p10), 1043456  }
   0xf   : > { %176 = sbr.rel (%p173_p10) target bundleno = 288 (0x120), region = 32  ;;  %1107 = vmatprep.subr.bf16.mxu0 (!%p173_p10), %v1210_v0  ;;  %1145 = vmatprep.subr.bf16.mxu1 (!%p173_p10), %v1210_v0  ;;  %p204_p11 = scmp.lt.s32.totalorder (!%p173_p10), %s885_s30, 63  ;;  %vm357_vm1 = vcmask (!%p173_p10), 326656   ;;  %v408_v3 = vsel (!%p173_p10), %vm406_vm0, %v1212_v2, 0  ;;  %v1437_v20 = vld [vmem:[%s1551_s2] ss:$0 sm:$0xff] (!%p173_p10) }
  0x10   : > { %1108 = vmatpush3.bf16.msra.mxu0 (!%p173_p10), %v1210_v0  ;;  %1148 = vmatpush3.bf16.msra.mxu1 (!%p173_p10), %v1210_v0  ;;  %s200_s18 = sand.u32 (!%p173_p10), 1, %s1291_s13   ;;  %s992_s23 = sshll.u32 (!%p173_p10), %s1299_s15, 11 }
  0x11   : > { %1109 = vmatprep.subr.bf16.mxu0 (!%p173_p10), %v1211_v1  ;;  %1146 = vmatprep.subr.bf16.mxu1 (!%p173_p10), %v1211_v1  ;;  %s884_s19 = sshll.u32 (!%p173_p10), %s200_s18, 7  ;;  %s1493_s15 = scalar_lea.hbm (!%p173_p10), %s1552_s3, %s992_s23 }
  0x12   : > { %s1450_s21 = scalar_lea.vmem (!%p173_p10), [#allocation2], %s884_s19  ;;  %s1503_s29 = scalar_lea.sflag (!%p173_p10), [#allocation3], %s200_s18 }
  0x13   : > { %s778_s26 = sshll.u32 (!%p173_p10), %s1450_s21, 4  ;;  %s1309_s4 = smov (!%p173_p10), [#allocation2]   ;;  %s1495_s26 = int_to_ptr.vmem [resolvable:$true] %s778_s26 }
  0x14   : > { %1110 = vmatpush3.bf16.msra.mxu0 (!%p173_p10), %v1211_v1  ;;  %1149 = vmatpush3.bf16.msra.mxu1 (!%p173_p10), %v1211_v1  ;;  %s1233_s5 = sshll.u32 (!%p173_p10), %s1309_s4, 4  ;;  %s1234_s5 = int_to_ptr.vmem [resolvable:$false] %s1233_s5 }
  0x15   : > { %1151 = vmatprep.subr.msk.bf16.mxu0 (!%p173_p10), %vm406_vm0, %v1212_v2  ;;  %1152 = vmatprep.subr.msk.bf16.mxu1 (!%p173_p10), %vm406_vm0, %v1212_v2  ;;  %p1236_p1 = scmp.lt.s32.totalorder (!%p173_p10), %s1495_s26, %s1234_s5 }
  0x16   : > { %s1563_s30 = smov (!%p204_p11, %s885_s30), 63 }
  0x17   : > { %s886_s6 = sshll.u32 %s1563_s30, 2  ;;  %s1229_s30 = scalar_lea.vmem %s1495_s26, 2048 }
  0x18   : > { %s1400_s9 = scalar_lea.vmem %s1549_s0, %s886_s6  ;;  %1112 = vmatpush3.bf16.msra.mxu0 %v408_v3  ;;  %1150 = vmatpush3.bf16.msra.mxu1 %v408_v3  ;;  %p1230_p12 = scmp.ne.s32.totalorder %s1495_s26, %s1229_s30 }
  0x19   : > { %v1213_v4 = vld [vmem:[%s1400_s9] sm:$0xff]   ;;  %v1215_v6 = vld [vmem:[%s1400_s9 + $0x8] sm:$0xff]   ;;  %v1217_v8 = vld [vmem:[%s1400_s9 + $0x10] sm:$0xff]   ;;  %s1235_s6 = scalar_lea.vmem %s1234_s5, 4096 }
  0x1a   : > { %v1214_v5 = vld [vmem:[%s1400_s9 + $0x40] sm:$0xff]   ;;  %1113 = vmatprep.mubr.msk.bf16.mxu0 %vm357_vm1, %v1213_v4  ;;  %v1216_v7 = vld [vmem:[%s1400_s9 + $0x48] sm:$0xff]   ;;  %v1218_v9 = vld [vmem:[%s1400_s9 + $0x50] sm:$0xff]   ;;  %p1231_p13 = pnand %p1230_p12, %p1372_p4  ;;  %p1237_p2 = scmp.lt.s32.totalorder %s1235_s6, %s1229_s30 }
  0x1b   : > { %1129 = vmatprep.mubr.msk.bf16.mxu1 %vm357_vm1, %v1214_v5  ;;  %1114 = vmatmul.mubr.msk.bf16.vlgmr.msra.gmra.mrb[0].mxu0 %vm357_vm1, %v1215_v6  ;;  %v1219_v10 = vld [vmem:[%s1400_s9 + $0x18] sm:$0xff]   ;;  %v1221_v12 = vld [vmem:[%s1400_s9 + $0x20] sm:$0xff]   ;;  %v1223_v14 = vld [vmem:[%s1400_s9 + $0x28] sm:$0xff]  }
  0x1c   : > { %1130 = vmatmul.mubr.msk.bf16.vlgmr.msra.gmra.mrb[0].mxu1 %vm357_vm1, %v1216_v7  ;;  %1117 = vmatprep.mubr.msk.bf16.mxu0 %vm357_vm1, %v1217_v8  ;;  %v1220_v11 = vld [vmem:[%s1400_s9 + $0x58] sm:$0xff]   ;;  %v1222_v13 = vld [vmem:[%s1400_s9 + $0x60] sm:$0xff]   ;;  %v1224_v15 = vld [vmem:[%s1400_s9 + $0x68] sm:$0xff]   ;;  %p1232_p0 = pneg %p1231_p13  ;;  %p1238_p3 = por %p1237_p2, %p1236_p1 }
  0x1d   : > { %1133 = vmatprep.mubr.msk.bf16.mxu1 %vm357_vm1, %v1218_v9  ;;  %v1225_v16 = vld [vmem:[%s1400_s9 + $0x30] sm:$0xff]   ;;  %v1227_v18 = vld [vmem:[%s1400_s9 + $0x38] sm:$0xff]  }
  0x1e   : > { %v1226_v17 = vld [vmem:[%s1400_s9 + $0x70] sm:$0xff]   ;;  %v1228_v19 = vld [vmem:[%s1400_s9 + $0x78] sm:$0xff]   ;;  %p1239_p5 = pnand %p1238_p3, %p1232_p0 }
  0x23   : > { %1118 = vmatmul.mubr.msk.bf16.gmra.mrb[4].mxu0 %vm357_vm1, %v1219_v10 }
  0x24   : > { %1134 = vmatmul.mubr.msk.bf16.gmra.mrb[4].mxu1 %vm357_vm1, %v1220_v11  ;;  %1121 = vmatprep.mubr.msk.bf16.mxu0 %vm357_vm1, %v1221_v12 }
  0x25   : > { %1137 = vmatprep.mubr.msk.bf16.mxu1 %vm357_vm1, %v1222_v13 }
  0x2b   : > { %1122 = vmatmul.mubr.msk.bf16.gmra.mrb[8].mxu0 %vm357_vm1, %v1223_v14 }
  0x2c   : > { %1138 = vmatmul.mubr.msk.bf16.gmra.mrb[8].mxu1 %vm357_vm1, %v1224_v15  ;;  %1125 = vmatprep.mubr.msk.bf16.mxu0 %vm357_vm1, %v1225_v16 }
  0x2d   : > { %1141 = vmatprep.mubr.msk.bf16.mxu1 %vm357_vm1, %v1226_v17 }
  0x33   : > { %1126 = vmatmul.mubr.msk.bf16.gmra.mrb[12].mxu0 %vm357_vm1, %v1227_v18 }
  0x34   : > { %1142 = vmatmul.mubr.msk.bf16.gmra.mrb[12].mxu1 %vm357_vm1, %v1228_v19 }
  0xee   : > { %v1115_v21 = vpop.f32.mrb[0].mxu0 }
  0xef   : > { %v1131_v22 = vpop.f32.mrb[0].mxu1  ;;  %v453_v23 = vadd.f32 %v1115_v21, %v1437_v20  ;;  %v444_v25 = vpop.f32.mrb[1].mxu0 }
  0xf0   : > { %v517_v24 = vadd.f32 %v1131_v22, %v1437_v20  ;;  %v508_v26 = vpop.f32.mrb[1].mxu1  ;;  %v445_v27 = vadd.f32 %v1437_v20, %v444_v25  ;;  %v1116_v29 = vpop.f32.mrb[2].mxu0 }
  0xf1   : > { %v509_v28 = vadd.f32 %v1437_v20, %v508_v26  ;;  %v1132_v30 = vpop.f32.mrb[2].mxu1  ;;  %v456_v31 = vadd.f32 %v1116_v29, %v1437_v20  ;;  %v447_v33 = vpop.f32.mrb[3].mxu0  ;;  %v573_v37 = vmax.f32 %v453_v23, 0.0 }
  0xf2   : > { %v520_v32 = vadd.f32 %v1132_v30, %v1437_v20  ;;  %v511_v34 = vpop.f32.mrb[3].mxu1  ;;  %v448_v35 = vadd.f32 %v1437_v20, %v447_v33  ;;  %v589_v38 = vmax.f32 %v517_v24, 0.0  ;;  %v571_v41 = vmax.f32 %v445_v27, 0.0 }
  0xf3   : > { %v512_v36 = vadd.f32 %v1437_v20, %v511_v34  ;;  %v574_v39 = vmax.f32 %v456_v31, 0.0  ;;  %v587_v42 = vmax.f32 %v509_v28, 0.0 }
  0xf4   : > { %v590_v40 = vmax.f32 %v520_v32, 0.0  ;;  %v572_v43 = vmax.f32 %v448_v35, 0.0 }
  0xf5   : > { %v588_v44 = vmax.f32 %v512_v36, 0.0  ;;  %v1001_v45 = vpack.c.bf16 %v574_v39, %v573_v37 }
  0xf6   : > { %v1041_v46 = vpack.c.bf16 %v590_v40, %v589_v38  ;;  %v996_v47 = vpack.c.bf16 %v572_v43, %v571_v41  ;;  %v1119_v49 = vpop.f32.mrb[4].mxu0 }
  0xf7   : > { %v1036_v48 = vpack.c.bf16 %v588_v44, %v587_v42  ;;  %v1135_v50 = vpop.f32.mrb[4].mxu1  ;;  %1073 = vst [vmem:[%s1450_s21 + $0x8] sm:$0xff] %v1001_v45   ;;  %v469_v51 = vadd.f32 %v1119_v49, %v1437_v20  ;;  %v460_v53 = vpop.f32.mrb[5].mxu0 }
  0xf8   : > { %1081 = vst [vmem:[%s1450_s21 + $0x48] sm:$0xff] %v1041_v46   ;;  %v533_v52 = vadd.f32 %v1135_v50, %v1437_v20  ;;  %v524_v54 = vpop.f32.mrb[5].mxu1  ;;  %997 = vst [vmem:[%s1450_s21] sm:$0xff] %v996_v47   ;;  %v461_v55 = vadd.f32 %v1437_v20, %v460_v53  ;;  %v1120_v57 = vpop.f32.mrb[6].mxu0 }
  0xf9   : > { %1080 = vst [vmem:[%s1450_s21 + $0x40] sm:$0xff] %v1036_v48   ;;  %v525_v56 = vadd.f32 %v1437_v20, %v524_v54  ;;  %v1136_v58 = vpop.f32.mrb[6].mxu1  ;;  %v472_v59 = vadd.f32 %v1120_v57, %v1437_v20  ;;  %v463_v61 = vpop.f32.mrb[7].mxu0  ;;  %v577_v1 = vmax.f32 %v469_v51, 0.0 }
  0xfa   : > { %v536_v60 = vadd.f32 %v1136_v58, %v1437_v20  ;;  %v527_v62 = vpop.f32.mrb[7].mxu1  ;;  %v464_v63 = vadd.f32 %v1437_v20, %v463_v61  ;;  %v593_v2 = vmax.f32 %v533_v52, 0.0  ;;  %v575_v5 = vmax.f32 %v461_v55, 0.0 }
  0xfb   : > { %v528_v0 = vadd.f32 %v1437_v20, %v527_v62  ;;  %v578_v3 = vmax.f32 %v472_v59, 0.0  ;;  %v591_v6 = vmax.f32 %v525_v56, 0.0 }
  0xfc   : > { %v594_v4 = vmax.f32 %v536_v60, 0.0  ;;  %v576_v7 = vmax.f32 %v464_v63, 0.0 }
  0xfd   : > { %v592_v8 = vmax.f32 %v528_v0, 0.0  ;;  %v1011_v9 = vpack.c.bf16 %v578_v3, %v577_v1 }
  0xfe   : > { %v1051_v10 = vpack.c.bf16 %v594_v4, %v593_v2  ;;  %v1006_v11 = vpack.c.bf16 %v576_v7, %v575_v5  ;;  %v1123_v13 = vpop.f32.mrb[8].mxu0 }
  0xff   : > { %v1046_v12 = vpack.c.bf16 %v592_v8, %v591_v6  ;;  %v1139_v14 = vpop.f32.mrb[8].mxu1  ;;  %1075 = vst [vmem:[%s1450_s21 + $0x18] sm:$0xff] %v1011_v9   ;;  %v485_v15 = vadd.f32 %v1123_v13, %v1437_v20  ;;  %v476_v17 = vpop.f32.mrb[9].mxu0 }
 0x100   : > { %1083 = vst [vmem:[%s1450_s21 + $0x58] sm:$0xff] %v1051_v10   ;;  %v549_v16 = vadd.f32 %v1139_v14, %v1437_v20  ;;  %v540_v18 = vpop.f32.mrb[9].mxu1  ;;  %1074 = vst [vmem:[%s1450_s21 + $0x10] sm:$0xff] %v1006_v11   ;;  %v477_v19 = vadd.f32 %v1437_v20, %v476_v17  ;;  %v1124_v22 = vpop.f32.mrb[10].mxu0 }
 0x101   : > { %1082 = vst [vmem:[%s1450_s21 + $0x50] sm:$0xff] %v1046_v12   ;;  %v541_v21 = vadd.f32 %v1437_v20, %v540_v18  ;;  %v1140_v23 = vpop.f32.mrb[10].mxu1  ;;  %v488_v24 = vadd.f32 %v1124_v22, %v1437_v20  ;;  %v479_v26 = vpop.f32.mrb[11].mxu0  ;;  %v581_v30 = vmax.f32 %v485_v15, 0.0 }
 0x102   : > { %v552_v25 = vadd.f32 %v1140_v23, %v1437_v20  ;;  %v543_v27 = vpop.f32.mrb[11].mxu1  ;;  %v480_v28 = vadd.f32 %v1437_v20, %v479_v26  ;;  %v597_v31 = vmax.f32 %v549_v16, 0.0  ;;  %v579_v34 = vmax.f32 %v477_v19, 0.0 }
 0x103   : > { %v544_v29 = vadd.f32 %v1437_v20, %v543_v27  ;;  %v582_v32 = vmax.f32 %v488_v24, 0.0  ;;  %v595_v35 = vmax.f32 %v541_v21, 0.0 }
 0x104   : > { %v598_v33 = vmax.f32 %v552_v25, 0.0  ;;  %v580_v36 = vmax.f32 %v480_v28, 0.0 }
 0x105   : > { %v596_v37 = vmax.f32 %v544_v29, 0.0  ;;  %v1021_v38 = vpack.c.bf16 %v582_v32, %v581_v30 }
 0x106   : > { %v1061_v39 = vpack.c.bf16 %v598_v33, %v597_v31  ;;  %v1016_v40 = vpack.c.bf16 %v580_v36, %v579_v34  ;;  %v1127_v42 = vpop.f32.mrb[12].mxu0 }
 0x107   : > { %v1056_v41 = vpack.c.bf16 %v596_v37, %v595_v35  ;;  %v1143_v43 = vpop.f32.mrb[12].mxu1  ;;  %1077 = vst [vmem:[%s1450_s21 + $0x28] sm:$0xff] %v1021_v38   ;;  %v501_v44 = vadd.f32 %v1127_v42, %v1437_v20  ;;  %v492_v46 = vpop.f32.mrb[13].mxu0 }
 0x108   : > { %1085 = vst [vmem:[%s1450_s21 + $0x68] sm:$0xff] %v1061_v39   ;;  %v565_v45 = vadd.f32 %v1143_v43, %v1437_v20  ;;  %v556_v47 = vpop.f32.mrb[13].mxu1  ;;  %1076 = vst [vmem:[%s1450_s21 + $0x20] sm:$0xff] %v1016_v40   ;;  %v493_v48 = vadd.f32 %v1437_v20, %v492_v46  ;;  %v1128_v50 = vpop.f32.mrb[14].mxu0 }
 0x109   : > { %1084 = vst [vmem:[%s1450_s21 + $0x60] sm:$0xff] %v1056_v41   ;;  %v557_v49 = vadd.f32 %v1437_v20, %v556_v47  ;;  %v1144_v51 = vpop.f32.mrb[14].mxu1  ;;  %v504_v52 = vadd.f32 %v1128_v50, %v1437_v20  ;;  %v495_v54 = vpop.f32.mrb[15].mxu0  ;;  %v585_v58 = vmax.f32 %v501_v44, 0.0 }
 0x10a   : > { %v568_v53 = vadd.f32 %v1144_v51, %v1437_v20  ;;  %v559_v55 = vpop.f32.mrb[15].mxu1  ;;  %v496_v56 = vadd.f32 %v1437_v20, %v495_v54  ;;  %v601_v59 = vmax.f32 %v565_v45, 0.0  ;;  %v583_v62 = vmax.f32 %v493_v48, 0.0 }
 0x10b   : > { %v560_v57 = vadd.f32 %v1437_v20, %v559_v55  ;;  %v586_v60 = vmax.f32 %v504_v52, 0.0  ;;  %v599_v63 = vmax.f32 %v557_v49, 0.0 }
 0x10c   : > { %v602_v61 = vmax.f32 %v568_v53, 0.0  ;;  %v584_v0 = vmax.f32 %v496_v56, 0.0 }
 0x10d   : > { %v600_v1 = vmax.f32 %v560_v57, 0.0  ;;  %v1031_v2 = vpack.c.bf16 %v586_v60, %v585_v58 }
 0x10e   : > { %v1071_v3 = vpack.c.bf16 %v602_v61, %v601_v59  ;;  %v1026_v20 = vpack.c.bf16 %v584_v0, %v583_v62 }
 0x10f   : > { %v1066_v4 = vpack.c.bf16 %v600_v1, %v599_v63  ;;  %1079 = vst [vmem:[%s1450_s21 + $0x38] sm:$0xff] %v1031_v2  }
 0x110   : > { %1087 = vst [vmem:[%s1450_s21 + $0x78] sm:$0xff] %v1071_v3   ;;  %1078 = vst [vmem:[%s1450_s21 + $0x30] sm:$0xff] %v1026_v20  }
 0x111   : > { %1086 = vst [vmem:[%s1450_s21 + $0x70] sm:$0xff] %v1066_v4  }
 0x112   : > { %1242 = shalt.err (!%p1239_p5)
}
 0x113   : > { %s1243_s7 = scalar_lea.hbm %s1493_s15, 2048  ;;  %s1247_s10 = scalar_lea.hbm %s1552_s3, 4096 }
 0x114   : > { %p1244_p6 = scmp.ne.s32.totalorder %s1493_s15, %s1243_s7  ;;  %p1248_p10 = scmp.lt.u32.totalorder %s1493_s15, %s1552_s3 }
 0x115   : > { %p1249_p11 = scmp.lt.u32.totalorder %s1247_s10, %s1243_s7  ;;  %p1251_p13 = scmp.lt.u32.totalorder %s1243_s7, %s1493_s15 }
 0x116   : > { %p1245_p7 = pnand %p1244_p6, %p1372_p4 }
 0x117   : > { %p1250_p12 = por %p1249_p11, %p1248_p10 }
 0x118   : > { %p1246_p9 = pneg %p1245_p7 }
 0x119   : > { %p1252_p0 = por %p1251_p13, %p1250_p12 }
 0x11b   : > { %p1253_p1 = pnand %p1252_p0, %p1246_p9 }
 0x11d   : > { %1256 = shalt.err (!%p1253_p1)
}
 0x11e   : > { %s1310_s19 = smov 64   ;;  %s1311_s21 = smov 4  }
 0x11f   : > { %1153 = dma.vmem_to_hbm [thread:$0]  (%p1372_p4), %s1495_s26, 2048, %s1493_s15, %s1503_s29, %s1310_s19, %s1310_s19, %s1311_s21  }
 0x120 PF: > { %p1159_p2 = scmp.ge.s32.totalorder %s1307_s17, 2  ;;  %s793_s23 = sand.u32 1, %s1287_s12  }
 0x121   : > { %s794_s27 = scalar_lea.sflag [#allocation3], %s793_s23 }
 0x122   : > { %p1156_p3 = pnand %p1159_p2, %p1379_p8 }
 0x124   : > { %1282 = dma.done.wait (!%p1156_p3), %s794_s27, 2048  }
 0x125   : > { %1284 = vsyncadd (!%p1156_p3), %s794_s27, 4294965248  ;;  %s16_s17 = sadd.s32 1, %s1307_s17   ;;  %s1555_s12 = smov %s1291_s13 }
 0x126   : > { %p13_p5 = scmp.ge.s32.totalorder %s16_s17, 4   ;;  %s1556_s13 = smov %s1295_s14 }
 0x127   : > { %s1557_s14 = smov %s1385_s25  ;;  %s1558_s15 = smov %s1303_s16 }
 0x128   : > { %s1559_s16 = smov %s1561_s20  ;;  %15 = sbr.rel (!%p13_p5) target bundleno = 4 (0x4), region = 73 }
 0x12f   :  { %799 = vsyncpa [#allocation3], 1 }
 0x130   :  { %801 = vsyncpa [#allocation3 + $0x1], 1 }

</bundles_post_ra>
